<compile_context>
chip_gen: v7x
topology: tpu7x:2x2x1
jax: 0.10.0
libtpu: 0.0.40
codegen_flags: <defaults>
</compile_context>

<pallas_src>
import functools

import jax
import jax.numpy as jnp
from jax.experimental import pallas as pl
from jax.experimental.pallas import tpu as pltpu


# ---------------- glue: sampling / grouping (plain JAX) ----------------

def farthest_point_sample(xyz, npoint):
    """xyz: [B, N, 3] -> centroids: [B, npoint] int32 (deterministic start index 0)."""
    B, N, _ = xyz.shape

    def body(i, state):
        centroids, distance, farthest = state
        centroids = centroids.at[:, i].set(farthest)
        centroid = jnp.take_along_axis(xyz, farthest[:, None, None], axis=1)  # [B,1,3]
        dist = jnp.sum((xyz - centroid) ** 2, axis=-1)
        distance = jnp.minimum(distance, dist)
        farthest = jnp.argmax(distance, axis=-1).astype(jnp.int32)
        return centroids, distance, farthest

    centroids = jnp.zeros((B, npoint), jnp.int32)
    distance = jnp.full((B, N), 1e10, jnp.float32)
    farthest = jnp.zeros((B,), jnp.int32)
    centroids, _, _ = jax.lax.fori_loop(0, npoint, body, (centroids, distance, farthest))
    return centroids


def index_points(points, idx):
    """points: [B, N, C], idx: [B, ...] -> [B, ..., C]."""
    B = points.shape[0]
    C = points.shape[-1]
    flat = idx.reshape(B, -1)
    out = jnp.take_along_axis(points, flat[..., None], axis=1)
    return out.reshape(*idx.shape, C)


def square_distance(src, dst):
    """src [B,N,C], dst [B,M,C] -> [B,N,M]."""
    return jnp.sum((src[:, :, None, :] - dst[:, None, :, :]) ** 2, axis=-1)


def _round_up(x, m):
    return ((x + m - 1) // m) * m


# ---------------- Pallas kernel: fused (1x1 conv + BN) MLP + ReLU + max over K ----------------

def _mlp_max_kernel(x_ref, *rest, n_layers, K, Sg):
    # rest = (w0, b0, w1, b1, ..., out_ref)
    o_ref = rest[-1]
    wb = rest[:-1]

    h = x_ref[...]                                        # (K*Sg, C0p) bf16, rows k-major
    h32 = None
    for i in range(n_layers):
        w = wb[2 * i][...]                                # (Cin_p, Cout_p) bf16 fused conv+BN weight
        b = wb[2 * i + 1][...]                            # (1, Cout_p)     f32  fused conv+BN bias
        acc = jnp.dot(h, w, preferred_element_type=jnp.float32)   # MXU, f32 accumulation
        h32 = jnp.maximum(acc + b, 0.0)                   # bias + ReLU in f32 (VPU)
        h = h32.astype(jnp.bfloat16)                      # bf16 feed for the next matmul

    # max over neighbors: K-1 elementwise maxima over contiguous [Sg, C] slabs (VPU only).
    m = h32[0:Sg, :]
    for k in range(1, K):
        m = jnp.maximum(m, h32[k * Sg:(k + 1) * Sg, :])
    o_ref[...] = m.astype(o_ref.dtype)                    # lane-dense (Sg, 128*m) store


def transition_down_mlp(x_grouped, fused_ws, fused_bs, *, target_rows=256):
    """x_grouped: [B, S, K, C0] -> [B, S, C_last] via a single row-tiled Pallas kernel."""
    B, S, K, C0 = x_grouped.shape
    n_layers = len(fused_ws)
    assert n_layers >= 1
    C_last = fused_ws[-1].shape[1]

    LANE = 128
    c_dims = [C0] + [w.shape[1] for w in fused_ws]
    c_pad = [_round_up(c, LANE) for c in c_dims]
    C0p, CLp = c_pad[0], c_pad[-1]

    # Pad + cast fused weights (bf16) and biases (f32) to lane-dense shapes.
    ws_p, bs_p = [], []
    for li, (w, b) in enumerate(zip(fused_ws, fused_bs)):
        cin, cout = w.shape
        wp = jnp.zeros((c_pad[li], c_pad[li + 1]), jnp.float32).at[:cin, :cout].set(w)
        bp = jnp.zeros((1, c_pad[li + 1]), jnp.float32).at[:, :cout].set(b.reshape(1, -1))
        ws_p.append(wp.astype(jnp.bfloat16))
        bs_p.append(bp)

    # Collapse batch into the row dimension and pick a row tile:
    #   Sg points per tile (multiple of 8) -> K*Sg rows per MXU tile (~target_rows).
    total_pts = B * S
    Sg = max(8, (max(target_rows // K, 8) // 8) * 8)
    Sg = min(Sg, _round_up(total_pts, 8))
    P = _round_up(total_pts, Sg)
    n_tiles = P // Sg
    rows_per_tile = K * Sg

    # Build the k-major row-tiled input slab: [n_tiles, K*Sg, C0p] (bf16).
    x = x_grouped.reshape(total_pts, K, C0).astype(jnp.float32)
    x = jnp.pad(x, ((0, P - total_pts), (0, 0), (0, C0p - C0)))
    x = x.reshape(n_tiles, Sg, K, C0p).transpose(0, 2, 1, 3).reshape(n_tiles, rows_per_tile, C0p)
    x = x.astype(jnp.bfloat16)

    in_specs = [pl.BlockSpec((pl.Squeezed(), rows_per_tile, C0p), lambda t: (t, 0, 0))]
    args = [x]
    for w, b in zip(ws_p, bs_p):
        in_specs.append(pl.BlockSpec(w.shape, lambda t: (0, 0)))
        in_specs.append(pl.BlockSpec(b.shape, lambda t: (0, 0)))
        args += [w, b]

    # Advisory cost estimate (helps XLA schedule the surrounding gather/FPS ops).
    flops = 2 * n_tiles * rows_per_tile * sum(c_pad[i] * c_pad[i + 1] for i in range(n_layers))
    bytes_accessed = (n_tiles * rows_per_tile * C0p * 2
                      + sum(w.size * 2 + b.size * 4 for w, b in zip(ws_p, bs_p))
                      + n_tiles * Sg * CLp * 4)
    cost = pl.CostEstimate(flops=int(flops), transcendentals=0,
                           bytes_accessed=int(bytes_accessed))

    # Rough VMEM working-set estimate; only raise the scoped limit when needed (v7x: 64 MiB).
    w_bytes = sum(w.size * 2 + b.size * 4 for w, b in zip(ws_p, bs_p))
    act_bytes = rows_per_tile * max(c_pad) * (4 + 2)
    est_vmem = 2 * (rows_per_tile * C0p * 2 + Sg * CLp * 4) + 2 * w_bytes + 2 * act_bytes
    vmem_limit = None
    if est_vmem > 32 * 1024 * 1024:
        vmem_limit = int(min(est_vmem * 1.25, 60 * 1024 * 1024))

    kernel = functools.partial(_mlp_max_kernel, n_layers=n_layers, K=K, Sg=Sg)
    out = pl.pallas_call(
        kernel,
        out_shape=jax.ShapeDtypeStruct((n_tiles, Sg, CLp), jnp.float32),
        grid=(n_tiles,),
        in_specs=in_specs,
        out_specs=pl.BlockSpec((pl.Squeezed(), Sg, CLp), lambda t: (t, 0, 0)),
        compiler_params=pltpu.CompilerParams(
            dimension_semantics=("parallel",),
            vmem_limit_bytes=vmem_limit),
        cost_estimate=cost,
    )(*args)

    return out.reshape(P, CLp)[:total_pts, :C_last].reshape(B, S, C_last)


# ---------------- parameters (deterministic in-script init) ----------------

def init_params(key, channels):
    params = []
    last = channels[0]
    for out_c in channels[1:]:
        k1, k2, k3, k4, k5, k6, key = jax.random.split(key, 7)
        params.append(dict(
            W=0.1 * jax.random.normal(k1, (out_c, last), jnp.float32),   # Conv2d 1x1 weight [Cout, Cin]
            b=0.1 * jax.random.normal(k2, (out_c,), jnp.float32),        # Conv2d bias
            gamma=1.0 + 0.1 * jax.random.normal(k3, (out_c,), jnp.float32),
            beta=0.1 * jax.random.normal(k4, (out_c,), jnp.float32),
            mean=0.1 * jax.random.normal(k5, (out_c,), jnp.float32),
            var=1.0 + 0.1 * jnp.abs(jax.random.normal(k6, (out_c,), jnp.float32)),
        ))
        last = out_c
    return params


def fuse_conv_bn(params, eps=1e-5):
    """Fold eval-mode BN into the 1x1 conv: y = x @ W_f + b_f."""
    ws, bs = [], []
    for p in params:
        s = p["gamma"] / jnp.sqrt(p["var"] + eps)                 # [Cout]
        W_f = (p["W"] * s[:, None]).T.astype(jnp.float32)         # [Cin, Cout]
        b_f = ((p["b"] - p["mean"]) * s + p["beta"]).reshape(1, -1).astype(jnp.float32)
        ws.append(W_f)
        bs.append(b_f)
    return ws, bs


# ---------------- TransitionDown forward ----------------

def transition_down_forward(params, nneighbor, xyz, points):
    """xyz [B,N,3], points [B,N,D] -> (new_xyz [B,S,3], new_points [B,S,C_last]), S = N//3."""
    B, N, _ = xyz.shape
    npoint = N // 3
    fps_idx = farthest_point_sample(xyz, npoint)                  # [B, S]
    new_xyz = index_points(xyz, fps_idx)                          # [B, S, 3]
    dists = square_distance(new_xyz, xyz)                         # [B, S, N]
    _, idx = jax.lax.top_k(-dists, nneighbor)                     # kNN via top_k, [B, S, K]
    grouped_xyz = index_points(xyz, idx)                          # [B, S, K, 3]
    grouped_xyz_norm = grouped_xyz - new_xyz[:, :, None, :]
    grouped_points = index_points(points, idx)                    # [B, S, K, D]
    new_points = jnp.concatenate([grouped_xyz_norm, grouped_points], axis=-1)  # [B,S,K,3+D]

    ws, bs = fuse_conv_bn(params)
    out = transition_down_mlp(new_points, ws, bs)                 # [B, S, C_last]
    return new_xyz, out


# ---------------- pure-JAX reference for the kernel section (bf16-matmul matched) ----------------

def mlp_max_ref(x_grouped, ws, bs):
    h = x_grouped.astype(jnp.bfloat16)
    h32 = None
    for w, b in zip(ws, bs):
        acc = jnp.einsum('bskc,cd->bskd', h, w.astype(jnp.bfloat16),
                         preferred_element_type=jnp.float32)
        h32 = jnp.maximum(acc + b.reshape(1, 1, 1, -1), 0.0)
        h = h32.astype(jnp.bfloat16)
    return jnp.max(h32, axis=2)


if __name__ == "__main__":
    key = jax.random.PRNGKey(0)
    k_xyz, k_pts, k_par = jax.random.split(key, 3)

    B, N, D = 2, 24, 4          # points feature dim D; conv in_channel = 3 + D
    nneighbor = 8
    channels = (3 + D, 16, 32)  # TransitionDown(nneighbor, channels)

    xyz = jax.random.normal(k_xyz, (B, N, 3), jnp.float32)
    points = jax.random.normal(k_pts, (B, N, D), jnp.float32)
    params = init_params(k_par, channels)

    new_xyz, new_points = transition_down_forward(params, nneighbor, xyz, points)
    jax.block_until_ready((new_xyz, new_points))

    # sanity check the Pallas MLP+max against a pure-JAX reference on the same grouping
    fps_idx = farthest_point_sample(xyz, N // 3)
    nxyz = index_points(xyz, fps_idx)
    d = square_distance(nxyz, xyz)
    _, idx = jax.lax.top_k(-d, nneighbor)
    grouped = jnp.concatenate(
        [index_points(xyz, idx) - nxyz[:, :, None, :], index_points(points, idx)], axis=-1)
    ws, bs = fuse_conv_bn(params)
    ref = mlp_max_ref(grouped, ws, bs)
    assert new_xyz.shape == (B, N // 3, 3)
    assert new_points.shape == (B, N // 3, channels[-1])
    assert jnp.allclose(new_points, ref, atol=2e-2, rtol=2e-2), "kernel mismatch vs reference"

    print("KERNEL_OK")
</pallas_src>

<mosaic_0001>
module attributes {stable_mosaic.version = 11 : i64} {
  func.func @_mlp_max_kernel(%arg0: i32, %arg1: memref<1x128x128xbf16, #tpu.memory_space<vmem>>, %arg2: memref<128x128xbf16, #tpu.memory_space<vmem>>, %arg3: memref<1x128xf32, #tpu.memory_space<vmem>>, %arg4: memref<128x128xbf16, #tpu.memory_space<vmem>>, %arg5: memref<1x128xf32, #tpu.memory_space<vmem>>, %arg6: memref<1x16x128xf32, #tpu.memory_space<vmem>>) attributes {dimension_semantics = [#tpu.dimension_semantics<parallel>], iteration_bounds = array<i64: 1>, scalar_prefetch = 0 : i64, scratch_operands = 0 : i64, tpu.core_type = #tpu.core_type<tc>, window_params = [{transform_indices = @transform_0, window_bounds = array<i64: 1, 128, 128>}, {pipeline_mode = #tpu.pipeline_mode<synchronous>, transform_indices = @transform_1, window_bounds = array<i64: 128, 128>}, {pipeline_mode = #tpu.pipeline_mode<synchronous>, transform_indices = @transform_2, window_bounds = array<i64: 1, 128>}, {pipeline_mode = #tpu.pipeline_mode<synchronous>, transform_indices = @transform_3, window_bounds = array<i64: 128, 128>}, {pipeline_mode = #tpu.pipeline_mode<synchronous>, transform_indices = @transform_4, window_bounds = array<i64: 1, 128>}, {transform_indices = @transform_5, window_bounds = array<i64: 1, 16, 128>}]} {
    %c0 = arith.constant 0 : index
    %c0_0 = arith.constant 0 : index
    %c0_1 = arith.constant 0 : index
    %0 = vector.load %arg1[%c0, %c0_0, %c0_1] : memref<1x128x128xbf16, #tpu.memory_space<vmem>>, vector<1x128x128xbf16>
    %1 = vector.shape_cast %0 : vector<1x128x128xbf16> to vector<128x128xbf16>
    %c0_2 = arith.constant 0 : index
    %c0_3 = arith.constant 0 : index
    %2 = vector.load %arg2[%c0_2, %c0_3] : memref<128x128xbf16, #tpu.memory_space<vmem>>, vector<128x128xbf16>
    %c0_4 = arith.constant 0 : index
    %c0_5 = arith.constant 0 : index
    %3 = vector.load %arg3[%c0_4, %c0_5] : memref<1x128xf32, #tpu.memory_space<vmem>>, vector<1x128xf32>
    %cst = arith.constant dense<0.000000e+00> : vector<128x128xf32>
    %4 = tpu.matmul %1, %2, %cst {dimension_numbers = #tpu.dot_dimension_numbers<[1], [0], [0], [1], [0, 0, 1, 1], [], []>} : vector<128x128xbf16>, vector<128x128xbf16>, vector<128x128xf32> -> vector<128x128xf32>
    %5 = vector.broadcast %3 : vector<1x128xf32> to vector<128x128xf32>
    %6 = arith.addf %4, %5 : vector<128x128xf32>
    %cst_6 = arith.constant 0.000000e+00 : f32
    %7 = vector.broadcast %cst_6 : f32 to vector<128x128xf32>
    %8 = arith.maximumf %6, %7 : vector<128x128xf32>
    %9 = arith.truncf %8 : vector<128x128xf32> to vector<128x128xbf16>
    %c0_7 = arith.constant 0 : index
    %c0_8 = arith.constant 0 : index
    %10 = vector.load %arg4[%c0_7, %c0_8] : memref<128x128xbf16, #tpu.memory_space<vmem>>, vector<128x128xbf16>
    %c0_9 = arith.constant 0 : index
    %c0_10 = arith.constant 0 : index
    %11 = vector.load %arg5[%c0_9, %c0_10] : memref<1x128xf32, #tpu.memory_space<vmem>>, vector<1x128xf32>
    %cst_11 = arith.constant dense<0.000000e+00> : vector<128x128xf32>
    %12 = tpu.matmul %9, %10, %cst_11 {dimension_numbers = #tpu.dot_dimension_numbers<[1], [0], [0], [1], [0, 0, 1, 1], [], []>} : vector<128x128xbf16>, vector<128x128xbf16>, vector<128x128xf32> -> vector<128x128xf32>
    %13 = vector.broadcast %11 : vector<1x128xf32> to vector<128x128xf32>
    %14 = arith.addf %12, %13 : vector<128x128xf32>
    %cst_12 = arith.constant 0.000000e+00 : f32
    %15 = vector.broadcast %cst_12 : f32 to vector<128x128xf32>
    %16 = arith.maximumf %14, %15 : vector<128x128xf32>
    %17 = vector.extract_strided_slice %16 {offsets = [0, 0], sizes = [16, 128], strides = [1, 1]} : vector<128x128xf32> to vector<16x128xf32>
    %18 = vector.extract_strided_slice %16 {offsets = [16, 0], sizes = [16, 128], strides = [1, 1]} : vector<128x128xf32> to vector<16x128xf32>
    %19 = arith.maximumf %17, %18 : vector<16x128xf32>
    %20 = vector.extract_strided_slice %16 {offsets = [32, 0], sizes = [16, 128], strides = [1, 1]} : vector<128x128xf32> to vector<16x128xf32>
    %21 = arith.maximumf %19, %20 : vector<16x128xf32>
    %22 = vector.extract_strided_slice %16 {offsets = [48, 0], sizes = [16, 128], strides = [1, 1]} : vector<128x128xf32> to vector<16x128xf32>
    %23 = arith.maximumf %21, %22 : vector<16x128xf32>
    %24 = vector.extract_strided_slice %16 {offsets = [64, 0], sizes = [16, 128], strides = [1, 1]} : vector<128x128xf32> to vector<16x128xf32>
    %25 = arith.maximumf %23, %24 : vector<16x128xf32>
    %26 = vector.extract_strided_slice %16 {offsets = [80, 0], sizes = [16, 128], strides = [1, 1]} : vector<128x128xf32> to vector<16x128xf32>
    %27 = arith.maximumf %25, %26 : vector<16x128xf32>
    %28 = vector.extract_strided_slice %16 {offsets = [96, 0], sizes = [16, 128], strides = [1, 1]} : vector<128x128xf32> to vector<16x128xf32>
    %29 = arith.maximumf %27, %28 : vector<16x128xf32>
    %30 = vector.extract_strided_slice %16 {offsets = [112, 0], sizes = [16, 128], strides = [1, 1]} : vector<128x128xf32> to vector<16x128xf32>
    %31 = arith.maximumf %29, %30 : vector<16x128xf32>
    %c0_13 = arith.constant 0 : index
    %c0_14 = arith.constant 0 : index
    %c0_15 = arith.constant 0 : index
    %32 = vector.load %arg6[%c0_13, %c0_14, %c0_15] : memref<1x16x128xf32, #tpu.memory_space<vmem>>, vector<1x16x128xf32>
    %33 = vector.shape_cast %32 : vector<1x16x128xf32> to vector<16x128xf32>
    %34 = vector.shape_cast %31 : vector<16x128xf32> to vector<1x16x128xf32>
    tpu.vector_store %arg6[%c0_13, %c0_14, %c0_15], %34 {strides = array<i32>} : memref<1x16x128xf32, #tpu.memory_space<vmem>>, vector<1x16x128xf32>,
    return
  }
  func.func @transform_0(%arg0: i32) -> (i32, i32, i32) {
    %c0_i32 = arith.constant 0 : i32
    %c0_i32_0 = arith.constant 0 : i32
    %c0_i32_1 = arith.constant 0 : i32
    return %arg0, %c0_i32, %c0_i32_0 : i32, i32, i32
  }
  func.func @transform_1(%arg0: i32) -> (i32, i32) {
    %c0_i32 = arith.constant 0 : i32
    %c0_i32_0 = arith.constant 0 : i32
    %c0_i32_1 = arith.constant 0 : i32
    return %c0_i32, %c0_i32_0 : i32, i32
  }
  func.func @transform_2(%arg0: i32) -> (i32, i32) {
    %c0_i32 = arith.constant 0 : i32
    %c0_i32_0 = arith.constant 0 : i32
    %c0_i32_1 = arith.constant 0 : i32
    return %c0_i32, %c0_i32_0 : i32, i32
  }
  func.func @transform_3(%arg0: i32) -> (i32, i32) {
    %c0_i32 = arith.constant 0 : i32
    %c0_i32_0 = arith.constant 0 : i32
    %c0_i32_1 = arith.constant 0 : i32
    return %c0_i32, %c0_i32_0 : i32, i32
  }
  func.func @transform_4(%arg0: i32) -> (i32, i32) {
    %c0_i32 = arith.constant 0 : i32
    %c0_i32_0 = arith.constant 0 : i32
    %c0_i32_1 = arith.constant 0 : i32
    return %c0_i32, %c0_i32_0 : i32, i32
  }
  func.func @transform_5(%arg0: i32) -> (i32, i32, i32) {
    %c0_i32 = arith.constant 0 : i32
    %c0_i32_0 = arith.constant 0 : i32
    %c0_i32_1 = arith.constant 0 : i32
    return %arg0, %c0_i32, %c0_i32_0 : i32, i32, i32
  }
}

</mosaic_0001>

<bundles_post_ra>
// kernel: tpu_custom_call.1
= control target key start
LH: loop header
LB: loop body
LE: loop exit
PB: predicated region body
PF: predicated region fallthrough
CT: control target
= control target key end

     0   :  { %10 = vsyncpa [#allocation3], 0  ;;  %s893_s0 = inlined_call_operand.hbm [shape: bf16[1,128,128], index: 0, kind: input, shape index: {}]   ;;  %s894_s1 = inlined_call_operand.hbm [shape: bf16[128,128], index: 1, kind: input, shape index: {}]   ;;  %s895_s2 = inlined_call_operand.vmem [shape: f32[1,128], index: 2, kind: input, shape index: {}]   ;;  %s896_s3 = inlined_call_operand.hbm [shape: bf16[128,128], index: 3, kind: input, shape index: {}]   ;;  %s897_s4 = inlined_call_operand.vmem [shape: f32[1,128], index: 4, kind: input, shape index: {}]   ;;  %s898_s5 = inlined_call_operand.hbm [shape: f32[1,16,128], index: 5, kind: output, shape index: {}]  }
   0x1   :  { %11 = vsyncpa [#allocation6], 0 }
   0x2   :  { %12 = vsyncpa [#allocation4], 0  ;;  %s785_s18 = smov [#allocation5]   ;;  %s786_s20 = smov [#allocation2]  }
   0x3   :  { %s30_s19 = sshll.u32 %s785_s18, 4  ;;  %s18_s21 = sshll.u32 %s786_s20, 4  ;;  %s31_s19 = int_to_ptr.vmem [resolvable:$true] %s30_s19  ;;  %s823_s21 = int_to_ptr.vmem [resolvable:$true] %s18_s21 }
   0x4   :  { %s691_s24 = scalar_lea.hbm %s894_s1, 1024 }
   0x5   :  { %p692_p0 = scmp.ne.s32.totalorder %s894_s1, %s691_s24  ;;  %p695_p1 = scmp.lt.u32.totalorder %s691_s24, %s894_s1 }
   0x7   :  { %p697_p2 = pnand %p695_p1, %p692_p0 }
   0x9   :  { %700 = shalt.err (!%p697_p2)
}
   0xa   :  { %s701_s29 = scalar_lea.vmem %s31_s19, 1024  ;;  %p706_p4 = scmp.lt.s32.totalorder %s31_s19, %s31_s19 }
   0xb   :  { %p702_p3 = scmp.ne.s32.totalorder %s31_s19, %s701_s29  ;;  %p707_p5 = scmp.lt.s32.totalorder %s701_s29, %s701_s29 }
   0xd   :  { %p708_p6 = por %p707_p5, %p706_p4 }
   0xf   :  { %p709_p7 = pnand %p708_p6, %p702_p3 }
  0x11   :  { %712 = shalt.err (!%p709_p7)
}
  0x12   :  { %s787_s30 = smov 64   ;;  %s788_s6 = smov 4  }
  0x13   :  { %36 = dma.hbm_to_vmem [thread:$0]  %s894_s1, 1024, %s31_s19, [#allocation6], %s787_s30, %s787_s30, %s788_s6  }
  0x14   :  { %s713_s11 = scalar_lea.hbm %s893_s0, 1024 }
  0x15   :  { %p714_p8 = scmp.ne.s32.totalorder %s893_s0, %s713_s11  ;;  %p717_p9 = scmp.lt.u32.totalorder %s713_s11, %s893_s0 }
  0x17   :  { %p719_p10 = pnand %p717_p9, %p714_p8 }
  0x19   :  { %722 = shalt.err (!%p719_p10)
}
  0x1a   :  { %s723_s16 = scalar_lea.vmem %s823_s21, 1024  ;;  %p728_p12 = scmp.lt.s32.totalorder %s823_s21, %s823_s21 }
  0x1b   :  { %p724_p11 = scmp.ne.s32.totalorder %s823_s21, %s723_s16  ;;  %p729_p13 = scmp.lt.s32.totalorder %s723_s16, %s723_s16 }
  0x1d   :  { %p730_p0 = por %p729_p13, %p728_p12 }
  0x1f   :  { %p731_p1 = pnand %p730_p0, %p724_p11 }
  0x21   :  { %734 = shalt.err (!%p731_p1)
}
  0x22   :  { %24 = dma.hbm_to_vmem [thread:$0]  %s893_s0, 1024, %s823_s21, [#allocation3], %s787_s30, %s787_s30, %s788_s6  }
  0x23   :  { %s789_s18 = smov [#allocation7]   ;;  %s735_s23 = scalar_lea.hbm %s896_s3, 1024 }
  0x24   :  { %s44_s19 = sshll.u32 %s789_s18, 4  ;;  %p736_p2 = scmp.ne.s32.totalorder %s896_s3, %s735_s23  ;;  %s45_s19 = int_to_ptr.vmem [resolvable:$true] %s44_s19 }
  0x25   :  { %p739_p3 = scmp.lt.u32.totalorder %s735_s23, %s896_s3 }
  0x27   :  { %p741_p4 = pnand %p739_p3, %p736_p2 }
  0x29   :  { %744 = shalt.err (!%p741_p4)
}
  0x2a   :  { %s745_s28 = scalar_lea.vmem %s45_s19, 1024  ;;  %p750_p6 = scmp.lt.s32.totalorder %s45_s19, %s45_s19 }
  0x2b   :  { %p746_p5 = scmp.ne.s32.totalorder %s45_s19, %s745_s28  ;;  %p751_p7 = scmp.lt.s32.totalorder %s745_s28, %s745_s28 }
  0x2d   :  { %p752_p8 = por %p751_p7, %p750_p6 }
  0x2f   :  { %p753_p9 = pnand %p752_p8, %p746_p5 }
  0x31   :  { %756 = shalt.err (!%p753_p9)
}
  0x32   :  { %50 = dma.hbm_to_vmem [thread:$0]  %s896_s3, 1024, %s45_s19, [#allocation6], %s787_s30, %s787_s30, %s788_s6  }
  0x33   :  { %779 = dma.done.wait [#allocation3], 1024  }
  0x34   :  { %780 = vsyncadd [#allocation3], 4294966272 }
  0x35   :  { %781 = dma.done.wait [#allocation6], 2048  }
  0x36   :  { %782 = vsyncadd [#allocation6], 4294965248  ;;  %v667_v0 = vld [vmem:[#allocation5] sm:$0xff]   ;;  %v668_v1 = vld [vmem:[#allocation5 + $0x8] sm:$0xff]  }
  0x37   :  { %595 = vmatprep.subr.bf16.mxu0 %v667_v0  ;;  %v669_v2 = vld [vmem:[#allocation5 + $0x10] sm:$0xff]   ;;  %v670_v3 = vld [vmem:[#allocation5 + $0x18] sm:$0xff]   ;;  %v675_v4 = vld [vmem:[#allocation2] sm:$0xff]  }
  0x38   :  { %596 = vmatpush3.bf16.msra.mxu0 %v667_v0  ;;  %611 = vmatprep.mubr.bf16.mxu0 %v675_v4  ;;  %v671_v5 = vld [vmem:[#allocation5 + $0x20] sm:$0xff]   ;;  %v672_v6 = vld [vmem:[#allocation5 + $0x28] sm:$0xff]   ;;  %v673_v9 = vld [vmem:[#allocation5 + $0x30] sm:$0xff]  }
  0x39   :  { %597 = vmatprep.subr.bf16.mxu0 %v668_v1  ;;  %v683_v7 = vld [vmem:[#allocation7] sm:$0xff]   ;;  %v684_v8 = vld [vmem:[#allocation7 + $0x8] sm:$0xff]   ;;  %v685_v10 = vld [vmem:[#allocation7 + $0x10] sm:$0xff]  }
  0x3a   :  { %627 = vmatprep.subr.bf16.mxu1 %v683_v7  ;;  %v674_v11 = vld [vmem:[#allocation5 + $0x38] sm:$0xff]   ;;  %v687_v13 = vld [vmem:[#allocation7 + $0x20] sm:$0xff]   ;;  %v676_v14 = vld [vmem:[#allocation2 + $0x8] sm:$0xff]  }
  0x3b   :  { %628 = vmatpush3.bf16.msra.mxu1 %v683_v7  ;;  %v686_v12 = vld [vmem:[#allocation7 + $0x18] sm:$0xff]   ;;  %v677_v15 = vld [vmem:[#allocation2 + $0x10] sm:$0xff]   ;;  %v688_v16 = vld [vmem:[#allocation7 + $0x28] sm:$0xff]  }
  0x3c   :  { %598 = vmatpush3.bf16.msra.mxu0 %v668_v1  ;;  %629 = vmatprep.subr.bf16.mxu1 %v684_v8  ;;  %v678_v17 = vld [vmem:[#allocation2 + $0x18] sm:$0xff]   ;;  %v679_v18 = vld [vmem:[#allocation2 + $0x20] sm:$0xff]   ;;  %v680_v19 = vld [vmem:[#allocation2 + $0x28] sm:$0xff]  }
  0x3d   :  { %599 = vmatprep.subr.bf16.mxu0 %v669_v2  ;;  %v681_v20 = vld [vmem:[#allocation2 + $0x30] sm:$0xff]   ;;  %v682_v21 = vld [vmem:[#allocation2 + $0x38] sm:$0xff]   ;;  %v537_v24 = vld [vmem:[%s895_s2] ss:$0 sm:$0xff] }
  0x3e   :  { %v689_v22 = vld [vmem:[#allocation7 + $0x30] sm:$0xff]   ;;  %v690_v23 = vld [vmem:[#allocation7 + $0x38] sm:$0xff]  }
  0x3f   :  { %630 = vmatpush3.bf16.msra.mxu1 %v684_v8 }
  0x40   :  { %600 = vmatpush3.bf16.msra.mxu0 %v669_v2  ;;  %631 = vmatprep.subr.bf16.mxu1 %v685_v10 }
  0x41   :  { %601 = vmatprep.subr.bf16.mxu0 %v670_v3 }
  0x43   :  { %632 = vmatpush3.bf16.msra.mxu1 %v685_v10 }
  0x44   :  { %602 = vmatpush3.bf16.msra.mxu0 %v670_v3  ;;  %633 = vmatprep.subr.bf16.mxu1 %v686_v12 }
  0x45   :  { %603 = vmatprep.subr.bf16.mxu0 %v671_v5 }
  0x47   :  { %634 = vmatpush3.bf16.msra.mxu1 %v686_v12 }
  0x48   :  { %604 = vmatpush3.bf16.msra.mxu0 %v671_v5  ;;  %635 = vmatprep.subr.bf16.mxu1 %v687_v13 }
  0x49   :  { %605 = vmatprep.subr.bf16.mxu0 %v672_v6 }
  0x4b   :  { %636 = vmatpush3.bf16.msra.mxu1 %v687_v13 }
  0x4c   :  { %606 = vmatpush3.bf16.msra.mxu0 %v672_v6  ;;  %637 = vmatprep.subr.bf16.mxu1 %v688_v16 }
  0x4d   :  { %607 = vmatprep.subr.bf16.mxu0 %v673_v9 }
  0x4f   :  { %638 = vmatpush3.bf16.msra.mxu1 %v688_v16 }
  0x50   :  { %608 = vmatpush3.bf16.msra.mxu0 %v673_v9  ;;  %639 = vmatprep.subr.bf16.mxu1 %v689_v22 }
  0x51   :  { %609 = vmatprep.subr.bf16.mxu0 %v674_v11 }
  0x53   :  { %640 = vmatpush3.bf16.msra.mxu1 %v689_v22 }
  0x54   :  { %610 = vmatpush3.bf16.msra.mxu0 %v674_v11  ;;  %641 = vmatprep.subr.bf16.mxu1 %v690_v23 }
  0x57   :  { %612 = vmatmul.mubr.bf16.vlgmr.msra.gmra.mrb[0].mxu0 %v676_v14  ;;  %642 = vmatpush3.bf16.msra.mxu1 %v690_v23 }
  0x58   :  { %615 = vmatprep.mubr.bf16.mxu0 %v677_v15 }
  0x5f   :  { %616 = vmatmul.mubr.bf16.gmra.mrb[4].mxu0 %v678_v17  ;;  %v554_v17 = vld [vmem:[%s897_s4] ss:$0 sm:$0xff]  ;;  %s790_s4 = smov [#allocation8]  }
  0x60   :  { %619 = vmatprep.mubr.bf16.mxu0 %v679_v18  ;;  %s524_s6 = sshll.u32 %s790_s4, 4  ;;  %s525_s6 = int_to_ptr.vmem [resolvable:$true] %s524_s6 }
  0x61   :  { %s757_s7 = scalar_lea.vmem %s525_s6, 256  ;;  %p762_p11 = scmp.lt.s32.totalorder %s525_s6, %s525_s6 }
  0x62   :  { %p758_p10 = scmp.ne.s32.totalorder %s525_s6, %s757_s7  ;;  %p763_p12 = scmp.lt.s32.totalorder %s757_s7, %s757_s7 }
  0x64   :  { %p764_p13 = por %p763_p12, %p762_p11 }
  0x66   :  { %p765_p0 = pnand %p764_p13, %p758_p10 }
  0x67   :  { %620 = vmatmul.mubr.bf16.gmra.mrb[8].mxu0 %v680_v19 }
  0x68   :  { %623 = vmatprep.mubr.bf16.mxu0 %v681_v20 }
  0x6f   :  { %624 = vmatmul.mubr.bf16.gmra.mrb[12].mxu0 %v682_v21 }
 0x12a   :  { %v613_v25 = vpop.f32.mrb[0].mxu0 }
 0x12b   :  { %v241_v26 = vadd.f32 %v613_v25, %v537_v24  ;;  %v232_v27 = vpop.f32.mrb[1].mxu0 }
 0x12c   :  { %v233_v28 = vadd.f32 %v537_v24, %v232_v27  ;;  %v614_v29 = vpop.f32.mrb[2].mxu0 }
 0x12d   :  { %v244_v30 = vadd.f32 %v614_v29, %v537_v24  ;;  %v235_v31 = vpop.f32.mrb[3].mxu0  ;;  %v297_v33 = vmax.f32 %v241_v26, 0.0 }
 0x12e   :  { %v236_v32 = vadd.f32 %v537_v24, %v235_v31  ;;  %v295_v35 = vmax.f32 %v233_v28, 0.0 }
 0x12f   :  { %v298_v34 = vmax.f32 %v244_v30, 0.0 }
 0x130   :  { %v296_v36 = vmax.f32 %v236_v32, 0.0 }
 0x131   :  { %v312_v37 = vpack.c.bf16 %v298_v34, %v297_v33 }
 0x132   :  { %v617_v38 = vpop.f32.mrb[4].mxu0  ;;  %v311_v39 = vpack.c.bf16 %v296_v36, %v295_v35 }
 0x133   :  { %v257_v40 = vadd.f32 %v617_v38, %v537_v24  ;;  %v248_v41 = vpop.f32.mrb[5].mxu0 }
 0x134   :  { %v249_v42 = vadd.f32 %v537_v24, %v248_v41  ;;  %v618_v43 = vpop.f32.mrb[6].mxu0  ;;  %643 = vmatprep.mubr.bf16.mxu1 %v311_v39 }
 0x135   :  { %v260_v44 = vadd.f32 %v618_v43, %v537_v24  ;;  %v251_v45 = vpop.f32.mrb[7].mxu0  ;;  %644 = vmatmul.mubr.bf16.vlgmr.msra.gmra.mrb[0].mxu1 %v312_v37  ;;  %v301_v47 = vmax.f32 %v257_v40, 0.0 }
 0x136   :  { %v252_v46 = vadd.f32 %v537_v24, %v251_v45  ;;  %v299_v49 = vmax.f32 %v249_v42, 0.0 }
 0x137   :  { %v302_v48 = vmax.f32 %v260_v44, 0.0 }
 0x138   :  { %v300_v50 = vmax.f32 %v252_v46, 0.0 }
 0x139   :  { %v314_v51 = vpack.c.bf16 %v302_v48, %v301_v47 }
 0x13a   :  { %v313_v52 = vpack.c.bf16 %v300_v50, %v299_v49  ;;  %v621_v53 = vpop.f32.mrb[8].mxu0 }
 0x13b   :  { %v273_v54 = vadd.f32 %v621_v53, %v537_v24  ;;  %v264_v55 = vpop.f32.mrb[9].mxu0 }
 0x13c   :  { %v265_v56 = vadd.f32 %v537_v24, %v264_v55  ;;  %v622_v57 = vpop.f32.mrb[10].mxu0  ;;  %647 = vmatprep.mubr.bf16.mxu1 %v313_v52 }
 0x13d   :  { %v276_v58 = vadd.f32 %v622_v57, %v537_v24  ;;  %v267_v59 = vpop.f32.mrb[11].mxu0  ;;  %648 = vmatmul.mubr.bf16.gmra.mrb[4].mxu1 %v314_v51  ;;  %v305_v61 = vmax.f32 %v273_v54, 0.0 }
 0x13e   :  { %v268_v60 = vadd.f32 %v537_v24, %v267_v59  ;;  %v303_v63 = vmax.f32 %v265_v56, 0.0 }
 0x13f   :  { %v306_v62 = vmax.f32 %v276_v58, 0.0 }
 0x140   :  { %v304_v0 = vmax.f32 %v268_v60, 0.0 }
 0x141   :  { %v316_v1 = vpack.c.bf16 %v306_v62, %v305_v61 }
 0x142   :  { %v315_v2 = vpack.c.bf16 %v304_v0, %v303_v63  ;;  %v625_v3 = vpop.f32.mrb[12].mxu0 }
 0x143   :  { %v289_v4 = vadd.f32 %v625_v3, %v537_v24  ;;  %v280_v5 = vpop.f32.mrb[13].mxu0 }
 0x144   :  { %v281_v6 = vadd.f32 %v537_v24, %v280_v5  ;;  %v626_v7 = vpop.f32.mrb[14].mxu0  ;;  %651 = vmatprep.mubr.bf16.mxu1 %v315_v2 }
 0x145   :  { %v292_v8 = vadd.f32 %v626_v7, %v537_v24  ;;  %v283_v9 = vpop.f32.mrb[15].mxu0  ;;  %652 = vmatmul.mubr.bf16.gmra.mrb[8].mxu1 %v316_v1  ;;  %v309_v11 = vmax.f32 %v289_v4, 0.0 }
 0x146   :  { %v284_v10 = vadd.f32 %v537_v24, %v283_v9  ;;  %v307_v13 = vmax.f32 %v281_v6, 0.0 }
 0x147   :  { %v310_v12 = vmax.f32 %v292_v8, 0.0 }
 0x148   :  { %v308_v14 = vmax.f32 %v284_v10, 0.0 }
 0x149   :  { %v318_v15 = vpack.c.bf16 %v310_v12, %v309_v11 }
 0x14a   :  { %v317_v16 = vpack.c.bf16 %v308_v14, %v307_v13 }
 0x14c   :  { %655 = vmatprep.mubr.bf16.mxu1 %v317_v16 }
 0x14d   :  { %656 = vmatmul.mubr.bf16.gmra.mrb[12].mxu1 %v318_v15 }
 0x208   :  { %v645_v18 = vpop.f32.mrb[0].mxu1 }
 0x209   :  { %v433_v19 = vadd.f32 %v645_v18, %v554_v17  ;;  %v424_v20 = vpop.f32.mrb[1].mxu1 }
 0x20a   :  { %v425_v21 = vadd.f32 %v554_v17, %v424_v20  ;;  %v646_v22 = vpop.f32.mrb[2].mxu1 }
 0x20b   :  { %v489_v23 = vmax.f32 %v433_v19, 0.0  ;;  %v436_v25 = vadd.f32 %v646_v22, %v554_v17  ;;  %v427_v24 = vpop.f32.mrb[3].mxu1 }
 0x20c   :  { %v487_v26 = vmax.f32 %v425_v21, 0.0  ;;  %v428_v27 = vadd.f32 %v554_v17, %v427_v24 }
 0x20d   :  { %v490_v28 = vmax.f32 %v436_v25, 0.0 }
 0x20e   :  { %v503_v29 = vmax.f32 %v487_v26, %v489_v23  ;;  %v488_v30 = vmax.f32 %v428_v27, 0.0 }
 0x210   :  { %v504_v31 = vmax.f32 %v488_v30, %v490_v28  ;;  %v649_v32 = vpop.f32.mrb[4].mxu1 }
 0x211   :  { %v440_v33 = vpop.f32.mrb[5].mxu1  ;;  %v449_v34 = vadd.f32 %v649_v32, %v554_v17 }
 0x212   :  { %v441_v35 = vadd.f32 %v554_v17, %v440_v33  ;;  %v650_v36 = vpop.f32.mrb[6].mxu1 }
 0x213   :  { %v443_v37 = vpop.f32.mrb[7].mxu1  ;;  %v452_v39 = vadd.f32 %v650_v36, %v554_v17  ;;  %v493_v41 = vmax.f32 %v449_v34, 0.0 }
 0x214   :  { %v491_v38 = vmax.f32 %v441_v35, 0.0  ;;  %v444_v40 = vadd.f32 %v554_v17, %v443_v37 }
 0x215   :  { %v494_v44 = vmax.f32 %v452_v39, 0.0 }
 0x216   :  { %v505_v42 = vmax.f32 %v503_v29, %v491_v38  ;;  %v492_v43 = vmax.f32 %v444_v40, 0.0 }
 0x218   :  { %v506_v45 = vmax.f32 %v504_v31, %v492_v43  ;;  %v653_v46 = vpop.f32.mrb[8].mxu1  ;;  %v507_v47 = vmax.f32 %v505_v42, %v493_v41 }
 0x219   :  { %v456_v48 = vpop.f32.mrb[9].mxu1  ;;  %v465_v49 = vadd.f32 %v653_v46, %v554_v17 }
 0x21a   :  { %v457_v50 = vadd.f32 %v554_v17, %v456_v48  ;;  %v654_v51 = vpop.f32.mrb[10].mxu1  ;;  %v508_v52 = vmax.f32 %v506_v45, %v494_v44 }
 0x21b   :  { %v459_v53 = vpop.f32.mrb[11].mxu1  ;;  %v468_v55 = vadd.f32 %v654_v51, %v554_v17  ;;  %v497_v57 = vmax.f32 %v465_v49, 0.0 }
 0x21c   :  { %v495_v54 = vmax.f32 %v457_v50, 0.0  ;;  %v460_v56 = vadd.f32 %v554_v17, %v459_v53 }
 0x21d   :  { %v498_v60 = vmax.f32 %v468_v55, 0.0 }
 0x21e   :  { %v509_v58 = vmax.f32 %v507_v47, %v495_v54  ;;  %v496_v59 = vmax.f32 %v460_v56, 0.0 }
 0x220   :  { %v510_v61 = vmax.f32 %v508_v52, %v496_v59  ;;  %v657_v62 = vpop.f32.mrb[12].mxu1  ;;  %v511_v63 = vmax.f32 %v509_v58, %v497_v57 }
 0x221   :  { %v472_v0 = vpop.f32.mrb[13].mxu1  ;;  %v481_v1 = vadd.f32 %v657_v62, %v554_v17 }
 0x222   :  { %v473_v2 = vadd.f32 %v554_v17, %v472_v0  ;;  %v658_v3 = vpop.f32.mrb[14].mxu1  ;;  %v512_v4 = vmax.f32 %v510_v61, %v498_v60 }
 0x223   :  { %v475_v5 = vpop.f32.mrb[15].mxu1  ;;  %v484_v7 = vadd.f32 %v658_v3, %v554_v17  ;;  %v501_v9 = vmax.f32 %v481_v1, 0.0 }
 0x224   :  { %v499_v6 = vmax.f32 %v473_v2, 0.0  ;;  %v476_v8 = vadd.f32 %v554_v17, %v475_v5 }
 0x225   :  { %v502_v13 = vmax.f32 %v484_v7, 0.0 }
 0x226   :  { %v513_v10 = vmax.f32 %v511_v63, %v499_v6  ;;  %v500_v11 = vmax.f32 %v476_v8, 0.0 }
 0x228   :  { %v515_v12 = vmax.f32 %v513_v10, %v501_v9  ;;  %v514_v14 = vmax.f32 %v512_v4, %v500_v11 }
 0x22a   :  { %517 = vst [vmem:[#allocation8] sm:$0xff] %v515_v12  ;;  %v516_v15 = vmax.f32 %v514_v14, %v502_v13 }
 0x22c   :  { %518 = vst [vmem:[#allocation8 + $0x8] sm:$0xff] %v516_v15 }
 0x22d   :  { %768 = shalt.err (!%p765_p0)
}
 0x22e   :  { %s769_s10 = scalar_lea.hbm %s898_s5, 256 }
 0x22f   :  { %p770_p1 = scmp.ne.s32.totalorder %s898_s5, %s769_s10  ;;  %p773_p2 = scmp.lt.u32.totalorder %s769_s10, %s898_s5 }
 0x231   :  { %p775_p3 = pnand %p773_p2, %p770_p1 }
 0x233   :  { %778 = shalt.err (!%p775_p3)
}
 0x234   :  { %s791_s15 = smov 128   ;;  %s792_s16 = smov 8  }
 0x235   :  { %530 = dma.vmem_to_hbm [thread:$0]  %s525_s6, 256, %s898_s5, [#allocation4], %s791_s15, %s791_s15, %s792_s16  }
 0x236   :  { %783 = dma.done.wait [#allocation4], 256  }
 0x237   :  { %784 = vsyncadd [#allocation4], 4294967040 }
 0x238   :  { %534 = vsyncpa [#allocation3], 1 }
 0x239   :  { %535 = vsyncpa [#allocation6], 1 }
 0x23a   :  { %536 = vsyncpa [#allocation4], 1 }

</bundles_post_ra>
